<compile_context>
chip_gen: v7x
topology: tpu7x:2x2x1
jax: 0.10.0
libtpu: 0.0.40
codegen_flags: <defaults>
</compile_context>

<pallas_src>
import functools

import jax
import jax.numpy as jnp
from jax.experimental import pallas as pl
from jax.experimental.pallas import tpu as pltpu


def _round_up(x, m):
    return ((x + m - 1) // m) * m


def _pad2d(a, rows, cols, dtype):
    r, c = a.shape
    return jnp.pad(a, ((0, rows - r), (0, cols - c))).astype(dtype)


# ----------------------------- fused Pallas kernel ---------------------------


def _fused_embed_kernel(patch_ref, wc_ref, wfc_ref, bfc_ref, wemb_ref, bemb_ref,
                        o_ref, pooled_ref, *, s, inv_spatial):
    """Conv-stem matmul + global-avg-pool accumulation + (fc, emb, L2-norm, *s).

    patch_ref : (B, tile_s, K_pad)  bf16 im2col patches for this spatial tile
    wc_ref    : (K_pad, C_pad)      bf16 flattened conv-stem weight
    wfc_ref   : (C_pad, F_pad)      bf16 backbone fc weight
    bfc_ref   : (1, F_pad)          f32 backbone fc bias
    wemb_ref  : (F_pad, D_pad)      bf16 embedding weight
    bemb_ref  : (1, D_pad)          f32 embedding bias
    o_ref     : (B, D_pad)          f32 scaled normalized embeddings (padded)
    pooled_ref: (B, C_pad)          f32 VMEM accumulator of the pooled sum
    """
    step = pl.program_id(0)

    @pl.when(step == 0)
    def _init():
        pooled_ref[...] = jnp.zeros_like(pooled_ref)

    b, tile_s, kp = patch_ref.shape
    patches = patch_ref[...].reshape(b * tile_s, kp)                   # bf16
    conv = jnp.dot(patches, wc_ref[...],
                   preferred_element_type=jnp.float32)                 # (b*tile_s, C_pad) f32

    # Per-batch row sums into the pooled accumulator (static slices only).
    for bb in range(b):
        seg = conv[bb * tile_s:(bb + 1) * tile_s, :]
        pooled_ref[bb:bb + 1, :] += jnp.sum(seg, axis=0, keepdims=True)

    @pl.when(step == pl.num_programs(0) - 1)
    def _finalize():
        pooled = (pooled_ref[...] * inv_spatial).astype(jnp.bfloat16)  # (B, C_pad)
        feats = jnp.dot(pooled, wfc_ref[...],
                        preferred_element_type=jnp.float32) + bfc_ref[...]
        emb = jnp.dot(feats.astype(jnp.bfloat16), wemb_ref[...],
                      preferred_element_type=jnp.float32) + bemb_ref[...]
        # torch F.normalize(p=2, dim=1): x / max(||x||, 1e-12); scale s folded
        # into one multiply, rsqrt on the EUP.  Padded emb columns are exactly
        # zero (zero weight cols / zero bias), so the norm is over the real D.
        ssq = jnp.sum(emb * emb, axis=-1, keepdims=True)
        scale = s * jax.lax.rsqrt(jnp.maximum(ssq, 1e-24))
        o_ref[...] = emb * scale


def fused_embedding_forward(patches, wc, wfc, bfc, wemb, bemb, *, s,
                            spatial_real, tile_s,
                            vmem_limit_bytes=32 * 1024 * 1024):
    b, s_pad, k_pad = patches.shape
    c_pad = wc.shape[1]
    f_pad = wfc.shape[1]
    d_pad = wemb.shape[1]
    assert s_pad % tile_s == 0
    n_steps = s_pad // tile_s

    kernel = functools.partial(_fused_embed_kernel, s=float(s),
                               inv_spatial=1.0 / float(spatial_real))

    flops = (2 * b * s_pad * k_pad * c_pad
             + 2 * b * c_pad * f_pad
             + 2 * b * f_pad * d_pad)
    bytes_accessed = (patches.size * patches.dtype.itemsize
                      + wc.size * wc.dtype.itemsize
                      + wfc.size * wfc.dtype.itemsize
                      + bfc.size * bfc.dtype.itemsize
                      + wemb.size * wemb.dtype.itemsize
                      + bemb.size * bemb.dtype.itemsize
                      + b * d_pad * 4)

    return pl.pallas_call(
        kernel,
        out_shape=jax.ShapeDtypeStruct((b, d_pad), jnp.float32),
        grid=(n_steps,),
        in_specs=[
            pl.BlockSpec((b, tile_s, k_pad), lambda i: (0, i, 0)),
            pl.BlockSpec((k_pad, c_pad), lambda i: (0, 0)),
            pl.BlockSpec((c_pad, f_pad), lambda i: (0, 0)),
            pl.BlockSpec((1, f_pad), lambda i: (0, 0)),
            pl.BlockSpec((f_pad, d_pad), lambda i: (0, 0)),
            pl.BlockSpec((1, d_pad), lambda i: (0, 0)),
        ],
        out_specs=pl.BlockSpec((b, d_pad), lambda i: (0, 0)),
        scratch_shapes=[pltpu.VMEM((b, c_pad), jnp.float32)],
        compiler_params=pltpu.CompilerParams(
            dimension_semantics=("arbitrary",),       # pooling reduction axis
            vmem_limit_bytes=vmem_limit_bytes),       # explicit, v7x-safe
        cost_estimate=pl.CostEstimate(flops=flops, transcendentals=b,
                                      bytes_accessed=bytes_accessed),
    )(patches, wc, wfc, bfc, wemb, bemb)


# ----------------------------- model -----------------------------------------


class EmbeddingNetworkPallas:
    """Synthetic EmbeddingNetwork (resnet18 backbone path, input_channels > 3)."""

    def __init__(self, key, num_input_channels=4, stem_out_channels=16,
                 kernel_size=7, stride=2, padding=3,
                 backbone_feat_dim=64, num_dims=32, s=64.0, spatial_tile=256):
        self.s = float(s)
        self.kernel_size = kernel_size
        self.stride = stride
        self.padding = padding
        self.num_dims = num_dims
        self.spatial_tile = spatial_tile

        k = jax.random.split(key, 5)

        # "Original" pretrained 3-channel conv1 weight (C_out, 3, kh, kw), bias=False.
        w_orig = 0.05 * jax.random.normal(
            k[0], (stem_out_channels, 3, kernel_size, kernel_size), jnp.float32)
        # CustomResNet._initialize_weights: ch0..2 copied; extra channels := ch0.
        if num_input_channels == 1:
            w_new = jnp.mean(w_orig, axis=1, keepdims=True)
        else:
            extra = num_input_channels - 3
            w_new = jnp.concatenate(
                [w_orig] + [w_orig[:, 0:1, :, :]] * extra, axis=1)
        self.conv1_w = w_new                                # (C_out, C_in, kh, kw)

        # Backbone fc (resnet18.fc stand-in): C_stem -> backbone_feat_dim
        self.fc_w = 0.05 * jax.random.normal(
            k[1], (stem_out_channels, backbone_feat_dim), jnp.float32)
        self.fc_b = 0.01 * jax.random.normal(
            k[2], (1, backbone_feat_dim), jnp.float32)

        # embedding_layer: Linear(backbone_feat_dim, num_dims)
        self.emb_w = 0.05 * jax.random.normal(
            k[3], (backbone_feat_dim, num_dims), jnp.float32)
        self.emb_b = 0.01 * jax.random.normal(k[4], (1, num_dims), jnp.float32)

        # ---- padded bf16 MXU operands for the fused kernel ----
        c_in = w_new.shape[1]
        K = c_in * kernel_size * kernel_size
        self.K = K
        self.K_pad = _round_up(K, 128)                  # 196 -> 256
        self.C_pad = _round_up(stem_out_channels, 128)  # 16  -> 128 lanes
        self.F_pad = _round_up(backbone_feat_dim, 128)  # 64  -> 128
        self.D_pad = _round_up(num_dims, 128)           # 32  -> 128

        # Conv stem as matmul: rows flattened (C_in, kh, kw) to match
        # lax.conv_general_dilated_patches' channel-major patch ordering.
        w_mat = w_new.transpose(1, 2, 3, 0).reshape(K, stem_out_channels)
        self.wc = _pad2d(w_mat, self.K_pad, self.C_pad, jnp.bfloat16)
        self.wfc = _pad2d(self.fc_w, self.C_pad, self.F_pad, jnp.bfloat16)
        self.bfc = _pad2d(self.fc_b, 1, self.F_pad, jnp.float32)
        self.wemb = _pad2d(self.emb_w, self.F_pad, self.D_pad, jnp.bfloat16)
        self.bemb = _pad2d(self.emb_b, 1, self.D_pad, jnp.float32)

    def __call__(self, x):
        # x: (B, C_in, H, W) NCHW float32
        B = x.shape[0]
        kh = kw = self.kernel_size

        # Patch extraction as one fused XLA gather (no python-loop im2col);
        # NHWC so the K patch dim lands on the lane axis without a big transpose.
        x_nhwc = jnp.transpose(x, (0, 2, 3, 1)).astype(jnp.bfloat16)
        patches = jax.lax.conv_general_dilated_patches(
            x_nhwc, filter_shape=(kh, kw),
            window_strides=(self.stride, self.stride),
            padding=((self.padding, self.padding),
                     (self.padding, self.padding)),
            dimension_numbers=("NHWC", "HWIO", "NHWC"))
        _, Ho, Wo, K = patches.shape
        S = Ho * Wo
        patches = patches.reshape(B, S, K)

        # Pad K to a 128 multiple and S to the tile size (zero rows/cols add
        # nothing to the dot / pooled sum; divide uses the real S).
        tile_s = min(self.spatial_tile, _round_up(S, 8))
        tile_s = max(8, (tile_s // 8) * 8)
        S_pad = _round_up(S, tile_s)
        patches = jnp.pad(patches,
                          ((0, 0), (0, S_pad - S), (0, self.K_pad - K)))

        # TODO(synk): timm resnet18 interior (bn1, relu, maxpool, layer1-4) is a
        # pretrained backbone body with no faithful synthetic Pallas equivalent;
        # conv stem + global-pool + fc below stand in for the backbone.

        out_pad = fused_embedding_forward(
            patches, self.wc, self.wfc, self.bfc, self.wemb, self.bemb,
            s=self.s, spatial_real=S, tile_s=tile_s)
        return out_pad[:, :self.num_dims]

    def reference_forward(self, x):
        """Pure-JAX reference with matching bf16-operand / f32-accumulate math."""
        xb = x.astype(jnp.bfloat16)
        wb = self.conv1_w.astype(jnp.bfloat16)
        conv = jax.lax.conv_general_dilated(
            xb, wb, window_strides=(self.stride, self.stride),
            padding=((self.padding, self.padding),
                     (self.padding, self.padding)),
            dimension_numbers=("NCHW", "OIHW", "NCHW"),
            preferred_element_type=jnp.float32)            # (B, C_out, Ho, Wo)
        pooled = jnp.mean(conv, axis=(2, 3))               # (B, C_out) f32
        feats = jnp.dot(pooled.astype(jnp.bfloat16),
                        self.fc_w.astype(jnp.bfloat16),
                        preferred_element_type=jnp.float32) + self.fc_b
        emb = jnp.dot(feats.astype(jnp.bfloat16),
                      self.emb_w.astype(jnp.bfloat16),
                      preferred_element_type=jnp.float32) + self.emb_b
        norm = jnp.sqrt(jnp.sum(emb * emb, axis=1, keepdims=True))
        return self.s * emb / jnp.maximum(norm, 1e-12)


# ----------------------------- main -------------------------------------------

if __name__ == "__main__":
    key = jax.random.PRNGKey(0)
    k_in, k_model = jax.random.split(key)

    B, C_in, H, W = 2, 4, 16, 16
    x = jax.random.normal(k_in, (B, C_in, H, W), jnp.float32)

    model = EmbeddingNetworkPallas(
        k_model, num_input_channels=C_in, stem_out_channels=16,
        backbone_feat_dim=64, num_dims=32, s=64.0,
        spatial_tile=32)   # S=64 -> 2 grid steps: exercises the pooled accumulator

    out = jax.block_until_ready(model(x))
    assert out.shape == (B, 32), out.shape

    # Rows must have L2 norm == s (normalize + scale epilogue is f32).
    norms = jnp.sqrt(jnp.sum(out * out, axis=1))
    assert bool(jnp.all(jnp.abs(norms - 64.0) < 1e-2)), norms

    # Cross-check against the pure-JAX reference (same bf16/f32 math).
    ref = model.reference_forward(x)
    max_err = float(jnp.max(jnp.abs(out - ref)))
    assert max_err < 0.25, max_err

    print("KERNEL_OK")
</pallas_src>

<mosaic_0001>
module attributes {stable_mosaic.version = 11 : i64} {
  func.func @_fused_embed_kernel(%arg0: i32, %arg1: memref<2x32x256xbf16, #tpu.memory_space<vmem>>, %arg2: memref<256x128xbf16, #tpu.memory_space<vmem>>, %arg3: memref<128x128xbf16, #tpu.memory_space<vmem>>, %arg4: memref<1x128xf32, #tpu.memory_space<vmem>>, %arg5: memref<128x128xbf16, #tpu.memory_space<vmem>>, %arg6: memref<1x128xf32, #tpu.memory_space<vmem>>, %arg7: memref<2x128xf32, #tpu.memory_space<vmem>>, %arg8: memref<2x128xf32, #tpu.memory_space<vmem>>) attributes {dimension_semantics = [#tpu.dimension_semantics<arbitrary>], iteration_bounds = array<i64: 2>, scalar_prefetch = 0 : i64, scratch_operands = 1 : i64, tpu.core_type = #tpu.core_type<tc>, window_params = [{transform_indices = @transform_0, window_bounds = array<i64: 2, 32, 256>}, {pipeline_mode = #tpu.pipeline_mode<synchronous>, transform_indices = @transform_1, window_bounds = array<i64: 256, 128>}, {pipeline_mode = #tpu.pipeline_mode<synchronous>, transform_indices = @transform_2, window_bounds = array<i64: 128, 128>}, {pipeline_mode = #tpu.pipeline_mode<synchronous>, transform_indices = @transform_3, window_bounds = array<i64: 1, 128>}, {pipeline_mode = #tpu.pipeline_mode<synchronous>, transform_indices = @transform_4, window_bounds = array<i64: 128, 128>}, {pipeline_mode = #tpu.pipeline_mode<synchronous>, transform_indices = @transform_5, window_bounds = array<i64: 1, 128>}, {pipeline_mode = #tpu.pipeline_mode<synchronous>, transform_indices = @transform_6, window_bounds = array<i64: 2, 128>}]} {
    %c0_i32 = arith.constant 0 : i32
    %0 = arith.cmpi eq, %arg0, %c0_i32 : i32
    %1 = arith.extui %0 : i1 to i32
    %c0_i32_0 = arith.constant 0 : i32
    %2 = arith.cmpi ne, %1, %c0_i32_0 : i32
    scf.if %2 {
      %cst_15 = arith.constant 0.000000e+00 : f32
      %22 = vector.broadcast %cst_15 : f32 to vector<2x128xf32>
      %c0_16 = arith.constant 0 : index
      %c0_17 = arith.constant 0 : index
      %23 = vector.load %arg8[%c0_16, %c0_17] : memref<2x128xf32, #tpu.memory_space<vmem>>, vector<2x128xf32>
      tpu.vector_store %arg8[%c0_16, %c0_17], %22 {strides = array<i32>} : memref<2x128xf32, #tpu.memory_space<vmem>>, vector<2x128xf32>,
    } else {
    }
    %c0 = arith.constant 0 : index
    %c0_1 = arith.constant 0 : index
    %c0_2 = arith.constant 0 : index
    %3 = vector.load %arg1[%c0, %c0_1, %c0_2] : memref<2x32x256xbf16, #tpu.memory_space<vmem>>, vector<2x32x256xbf16>
    %4 = vector.shape_cast %3 : vector<2x32x256xbf16> to vector<64x256xbf16>
    %c0_3 = arith.constant 0 : index
    %c0_4 = arith.constant 0 : index
    %5 = vector.load %arg2[%c0_3, %c0_4] : memref<256x128xbf16, #tpu.memory_space<vmem>>, vector<256x128xbf16>
    %cst = arith.constant dense<0.000000e+00> : vector<64x128xf32>
    %6 = tpu.matmul %4, %5, %cst {dimension_numbers = #tpu.dot_dimension_numbers<[1], [0], [0], [1], [0, 0, 1, 1], [], []>} : vector<64x256xbf16>, vector<256x128xbf16>, vector<64x128xf32> -> vector<64x128xf32>
    %7 = vector.extract_strided_slice %6 {offsets = [0, 0], sizes = [32, 128], strides = [1, 1]} : vector<64x128xf32> to vector<32x128xf32>
    %c0_5 = arith.constant 0 : index
    %c0_6 = arith.constant 0 : index
    %8 = vector.load %arg8[%c0_5, %c0_6] : memref<2x128xf32, #tpu.memory_space<vmem>>, vector<1x128xf32>
    %cst_7 = arith.constant dense<0.000000e+00> : vector<128xf32>
    %9 = vector.multi_reduction <add>, %7, %cst_7 [0] : vector<32x128xf32> to vector<128xf32>
    %10 = vector.shape_cast %9 : vector<128xf32> to vector<1x128xf32>
    %11 = arith.addf %8, %10 : vector<1x128xf32>
    %c0_8 = arith.constant 0 : index
    %c0_9 = arith.constant 0 : index
    %12 = vector.load %arg8[%c0_8, %c0_9] : memref<2x128xf32, #tpu.memory_space<vmem>>, vector<1x128xf32>
    tpu.vector_store %arg8[%c0_8, %c0_9], %11 {strides = array<i32>} : memref<2x128xf32, #tpu.memory_space<vmem>>, vector<1x128xf32>,
    %13 = vector.extract_strided_slice %6 {offsets = [32, 0], sizes = [32, 128], strides = [1, 1]} : vector<64x128xf32> to vector<32x128xf32>
    %c1 = arith.constant 1 : index
    %c0_10 = arith.constant 0 : index
    %14 = vector.load %arg8[%c1, %c0_10] : memref<2x128xf32, #tpu.memory_space<vmem>>, vector<1x128xf32>
    %cst_11 = arith.constant dense<0.000000e+00> : vector<128xf32>
    %15 = vector.multi_reduction <add>, %13, %cst_11 [0] : vector<32x128xf32> to vector<128xf32>
    %16 = vector.shape_cast %15 : vector<128xf32> to vector<1x128xf32>
    %17 = arith.addf %14, %16 : vector<1x128xf32>
    %c1_12 = arith.constant 1 : index
    %c0_13 = arith.constant 0 : index
    %18 = vector.load %arg8[%c1_12, %c0_13] : memref<2x128xf32, #tpu.memory_space<vmem>>, vector<1x128xf32>
    tpu.vector_store %arg8[%c1_12, %c0_13], %17 {strides = array<i32>} : memref<2x128xf32, #tpu.memory_space<vmem>>, vector<1x128xf32>,
    %c1_i32 = arith.constant 1 : i32
    %19 = arith.cmpi eq, %arg0, %c1_i32 : i32
    %20 = arith.extui %19 : i1 to i32
    %c0_i32_14 = arith.constant 0 : i32
    %21 = arith.cmpi ne, %20, %c0_i32_14 : i32
    scf.if %21 {
      %c0_15 = arith.constant 0 : index
      %c0_16 = arith.constant 0 : index
      %22 = vector.load %arg8[%c0_15, %c0_16] : memref<2x128xf32, #tpu.memory_space<vmem>>, vector<2x128xf32>
      %cst_17 = arith.constant 1.562500e-02 : f32
      %23 = vector.broadcast %cst_17 : f32 to vector<2x128xf32>
      %24 = arith.mulf %22, %23 : vector<2x128xf32>
      %25 = arith.truncf %24 : vector<2x128xf32> to vector<2x128xbf16>
      %c0_18 = arith.constant 0 : index
      %c0_19 = arith.constant 0 : index
      %26 = vector.load %arg3[%c0_18, %c0_19] : memref<128x128xbf16, #tpu.memory_space<vmem>>, vector<128x128xbf16>
      %cst_20 = arith.constant dense<0.000000e+00> : vector<2x128xf32>
      %27 = tpu.matmul %25, %26, %cst_20 {dimension_numbers = #tpu.dot_dimension_numbers<[1], [0], [0], [1], [0, 0, 1, 1], [], []>} : vector<2x128xbf16>, vector<128x128xbf16>, vector<2x128xf32> -> vector<2x128xf32>
      %c0_21 = arith.constant 0 : index
      %c0_22 = arith.constant 0 : index
      %28 = vector.load %arg4[%c0_21, %c0_22] : memref<1x128xf32, #tpu.memory_space<vmem>>, vector<1x128xf32>
      %29 = vector.broadcast %28 : vector<1x128xf32> to vector<2x128xf32>
      %30 = arith.addf %27, %29 : vector<2x128xf32>
      %31 = arith.truncf %30 : vector<2x128xf32> to vector<2x128xbf16>
      %c0_23 = arith.constant 0 : index
      %c0_24 = arith.constant 0 : index
      %32 = vector.load %arg5[%c0_23, %c0_24] : memref<128x128xbf16, #tpu.memory_space<vmem>>, vector<128x128xbf16>
      %cst_25 = arith.constant dense<0.000000e+00> : vector<2x128xf32>
      %33 = tpu.matmul %31, %32, %cst_25 {dimension_numbers = #tpu.dot_dimension_numbers<[1], [0], [0], [1], [0, 0, 1, 1], [], []>} : vector<2x128xbf16>, vector<128x128xbf16>, vector<2x128xf32> -> vector<2x128xf32>
      %c0_26 = arith.constant 0 : index
      %c0_27 = arith.constant 0 : index
      %34 = vector.load %arg6[%c0_26, %c0_27] : memref<1x128xf32, #tpu.memory_space<vmem>>, vector<1x128xf32>
      %35 = vector.broadcast %34 : vector<1x128xf32> to vector<2x128xf32>
      %36 = arith.addf %33, %35 : vector<2x128xf32>
      %37 = arith.mulf %36, %36 : vector<2x128xf32>
      %cst_28 = arith.constant dense<0.000000e+00> : vector<2xf32>
      %38 = vector.multi_reduction <add>, %37, %cst_28 [1] : vector<2x128xf32> to vector<2xf32>
      %39 = vector.shape_cast %38 : vector<2xf32> to vector<2x1xf32>
      %cst_29 = arith.constant 1.000000e-24 : f32
      %40 = vector.broadcast %cst_29 : f32 to vector<2x1xf32>
      %41 = arith.maximumf %39, %40 : vector<2x1xf32>
      %42 = math.rsqrt %41 : vector<2x1xf32>
      %cst_30 = arith.constant 6.400000e+01 : f32
      %43 = vector.broadcast %cst_30 : f32 to vector<2x1xf32>
      %44 = arith.mulf %43, %42 : vector<2x1xf32>
      %45 = vector.broadcast %44 : vector<2x1xf32> to vector<2x128xf32>
      %46 = arith.mulf %36, %45 : vector<2x128xf32>
      %c0_31 = arith.constant 0 : index
      %c0_32 = arith.constant 0 : index
      %47 = vector.load %arg7[%c0_31, %c0_32] : memref<2x128xf32, #tpu.memory_space<vmem>>, vector<2x128xf32>
      tpu.vector_store %arg7[%c0_31, %c0_32], %46 {strides = array<i32>} : memref<2x128xf32, #tpu.memory_space<vmem>>, vector<2x128xf32>,
    } else {
    }
    return
  }
  func.func @transform_0(%arg0: i32) -> (i32, i32, i32) {
    %c0_i32 = arith.constant 0 : i32
    %c0_i32_0 = arith.constant 0 : i32
    %c0_i32_1 = arith.constant 0 : i32
    return %c0_i32, %arg0, %c0_i32_0 : i32, i32, i32
  }
  func.func @transform_1(%arg0: i32) -> (i32, i32) {
    %c0_i32 = arith.constant 0 : i32
    %c0_i32_0 = arith.constant 0 : i32
    %c0_i32_1 = arith.constant 0 : i32
    return %c0_i32, %c0_i32_0 : i32, i32
  }
  func.func @transform_2(%arg0: i32) -> (i32, i32) {
    %c0_i32 = arith.constant 0 : i32
    %c0_i32_0 = arith.constant 0 : i32
    %c0_i32_1 = arith.constant 0 : i32
    return %c0_i32, %c0_i32_0 : i32, i32
  }
  func.func @transform_3(%arg0: i32) -> (i32, i32) {
    %c0_i32 = arith.constant 0 : i32
    %c0_i32_0 = arith.constant 0 : i32
    %c0_i32_1 = arith.constant 0 : i32
    return %c0_i32, %c0_i32_0 : i32, i32
  }
  func.func @transform_4(%arg0: i32) -> (i32, i32) {
    %c0_i32 = arith.constant 0 : i32
    %c0_i32_0 = arith.constant 0 : i32
    %c0_i32_1 = arith.constant 0 : i32
    return %c0_i32, %c0_i32_0 : i32, i32
  }
  func.func @transform_5(%arg0: i32) -> (i32, i32) {
    %c0_i32 = arith.constant 0 : i32
    %c0_i32_0 = arith.constant 0 : i32
    %c0_i32_1 = arith.constant 0 : i32
    return %c0_i32, %c0_i32_0 : i32, i32
  }
  func.func @transform_6(%arg0: i32) -> (i32, i32) {
    %c0_i32 = arith.constant 0 : i32
    %c0_i32_0 = arith.constant 0 : i32
    %c0_i32_1 = arith.constant 0 : i32
    return %c0_i32, %c0_i32_0 : i32, i32
  }
}

</mosaic_0001>

<bundles_post_ra>
// kernel: tpu_custom_call.1
= control target key start
LH: loop header
LB: loop body
LE: loop exit
PB: predicated region body
PF: predicated region fallthrough
CT: control target
= control target key end

     0   :  { %11 = vsyncpa [#allocation4], 0  ;;  %s1689_s0 = inlined_call_operand.hbm [shape: bf16[2,64,256], index: 0, kind: input, shape index: {}]   ;;  %s1690_s1 = inlined_call_operand.hbm [shape: bf16[256,128], index: 1, kind: input, shape index: {}]   ;;  %s1691_s2 = inlined_call_operand.hbm [shape: bf16[128,128], index: 2, kind: input, shape index: {}]   ;;  %s1692_s3 = inlined_call_operand.vmem [shape: f32[1,128], index: 3, kind: input, shape index: {}]   ;;  %s1693_s4 = inlined_call_operand.hbm [shape: bf16[128,128], index: 4, kind: input, shape index: {}]   ;;  %s1694_s5 = inlined_call_operand.vmem [shape: f32[1,128], index: 5, kind: input, shape index: {}]   ;;  %s1695_s6 = inlined_call_operand.hbm [shape: f32[2,128], index: 6, kind: output, shape index: {}]  }
   0x1   :  { %13 = vsyncpa [#allocation4 + $0x1], 0 }
   0x2   :  { %14 = vsyncpa [#allocation7], 0 }
   0x3   :  { %15 = vsyncpa [#allocation10], 0 }
   0x4   :  { %16 = vsyncpa [#allocation5], 0  ;;  %s1451_s21 = smov 0   ;;  %s1453_s22 = smov 0  }
   0x5   :  { %s1455_s23 = smov 0   ;;  %s1457_s24 = smov 0  }
   0x6 LB: > { %s1470_s25 = sadd.s32 4294967295, %s1399_s24   ;;  %s1473_s26 = sadd.s32 1, %s1399_s24   ;;  %s1399_s24 = sphi %s1457_s24, %s1718_s24   ;;  %s1395_s23 = sphi %s1455_s23, %s1717_s23   ;;  %s1391_s22 = sphi %s1453_s22, %s1716_s22   ;;  %s1387_s21 = sphi %s1451_s21, %s1715_s21  }
   0x7   : > { %s26_s27 = ssub.s32 %s1399_s24, %s1473_s26  ;;  %s29_s28 = sadd.s32 1, %s1395_s23 }
   0x8   : > { %p27_p0 = scmp.eq.s32.totalorder %s26_s27, 0  ;;  %p36_p1 = scmp.ne.s32.totalorder %s1395_s23, %s1391_s22 }
   0x9   : > { %p37_p2 = scmp.eq.s32.totalorder %s1399_s24, 0  ;;  %p42_p3 = scmp.ne.s32.totalorder %s1391_s22, %s1387_s21 }
   0xa   : > { %s1483_s29 = scalar_select %p27_p0, %s1395_s23, %s29_s28  }
   0xb   : > { %p1485_p4 = por %p37_p2, %p36_p1  ;;  %p1696_p5 = scmp.eq.s32.totalorder %s1470_s25, 0 }
   0xc   : > { %1700 = sst [smem:[#allocation19_spill]] %s1483_s29  ;;  %p927_p6 = scmp.ge.s32.totalorder %s1399_s24, 1 }
   0xd   : > { %s1701_s30 = scalar_select %p1485_p4, 1, 0 }
   0xe   : > { %p179_p7 = scmp.lt.s32.totalorder %s1399_s24, 3  ;;  %p1494_p8 = por %p1696_p5, %p42_p3 }
   0xf   : > { %s1401_s9 = smov [#allocation6]   ;;  %s1402_s12 = smov [#allocation8]  }
  0x10   : > { %s1702_s7 = scalar_select %p1494_p8, 1, 0 }
  0x11   : > { %p1499_p10 = pnand %p927_p6, %p179_p7  ;;  %s191_s10 = sshll.u32 %s1401_s9, 4  ;;  %s1505_s10 = int_to_ptr.vmem [resolvable:$true] %s191_s10 }
  0x12   : > { %s204_s13 = sshll.u32 %s1402_s12, 4  ;;  %s1403_s14 = smov [#allocation9]   ;;  %s1513_s13 = int_to_ptr.vmem [resolvable:$true] %s204_s13 }
  0x13   : > { %s1703_s8 = scalar_select %p1499_p10, 1, 0 }
  0x14   : > { %p1132_p11 = pneg %p1499_p10  ;;  %s1515_s15 = sshll.u32 %s1403_s14, 4  ;;  %s221_s15 = int_to_ptr.vmem [resolvable:$true] %s1515_s15 }
  0x15   : > { %s1243_s18 = scalar_lea.hbm %s1690_s1, 2048 }
  0x16   : > { %p1509_p12 = pnand %p1132_p11, %p1696_p5  ;;  %p1244_p13 = scmp.ne.s32.totalorder %s1690_s1, %s1243_s18 }
  0x17   : > { %p1250_p3 = scmp.lt.u32.totalorder %s1243_s18, %s1690_s1 }
  0x18   : > { %p1525_p0 = pneg %p1509_p12 }
  0x1a   : > { %p1246_p1 = pnand %p1525_p0, %p1244_p13 }
  0x1c   : > { %p1247_p2 = pneg %p1246_p1 }
  0x1e   : > { %p1252_p6 = pnand %p1250_p3, %p1247_p2 }
  0x20   : > { %1255 = shalt.err (!%p1252_p6)
}
  0x21   : > { %s1256_s9 = scalar_lea.vmem %s1505_s10, 2048  ;;  %p1264_p5 = scmp.lt.s32.totalorder %s1505_s10, %s1505_s10 }
  0x22   : > { %p1257_p7 = scmp.ne.s32.totalorder %s1505_s10, %s1256_s9  ;;  %p1265_p8 = scmp.lt.s32.totalorder %s1256_s9, %s1256_s9 }
  0x24   : > { %p1259_p11 = pnand %p1257_p7, %p1525_p0  ;;  %p1266_p13 = por %p1265_p8, %p1264_p5 }
  0x26   : > { %p1260_p9 = pneg %p1259_p11 }
  0x28   : > { %p1267_p1 = pnand %p1266_p13, %p1260_p9 }
  0x2a   : > { %1270 = shalt.err (!%p1267_p1)
}
  0x2b   : > { %s1404_s12 = smov 64   ;;  %s1405_s14 = smov 4  }
  0x2c   : > { %1135 = dma.hbm_to_vmem [thread:$0]  (!%p1509_p12), %s1690_s1, 2048, %s1505_s10, [#allocation7], %s1404_s12, %s1404_s12, %s1405_s14  }
  0x2d   : > { %s1271_s20 = scalar_lea.hbm %s1691_s2, 1024 }
  0x2e   : > { %p1272_p5 = scmp.ne.s32.totalorder %s1691_s2, %s1271_s20  ;;  %p1278_p2 = scmp.lt.u32.totalorder %s1271_s20, %s1691_s2 }
  0x30   : > { %p1274_p8 = pnand %p1272_p5, %p1525_p0 }
  0x32   : > { %p1275_p9 = pneg %p1274_p8 }
  0x34   : > { %p1280_p3 = pnand %p1278_p2, %p1275_p9 }
  0x36   : > { %1283 = shalt.err (!%p1280_p3)
}
  0x37   : > { %s1284_s10 = scalar_lea.vmem %s1513_s13, 1024  ;;  %p1292_p13 = scmp.lt.s32.totalorder %s1513_s13, %s1513_s13 }
  0x38   : > { %p1285_p6 = scmp.ne.s32.totalorder %s1513_s13, %s1284_s10  ;;  %p1293_p1 = scmp.lt.s32.totalorder %s1284_s10, %s1284_s10 }
  0x3a   : > { %p1287_p7 = pnand %p1285_p6, %p1525_p0  ;;  %p1294_p5 = por %p1293_p1, %p1292_p13 }
  0x3c   : > { %p1288_p11 = pneg %p1287_p7 }
  0x3e   : > { %p1295_p8 = pnand %p1294_p5, %p1288_p11 }
  0x40   : > { %1298 = shalt.err (!%p1295_p8)
}
  0x41   : > { %1138 = dma.hbm_to_vmem [thread:$0]  (!%p1509_p12), %s1691_s2, 1024, %s1513_s13, [#allocation7], %s1404_s12, %s1404_s12, %s1405_s14  }
  0x42   : > { %s1299_s19 = scalar_lea.hbm %s1693_s4, 1024 }
  0x43   : > { %p1300_p9 = scmp.ne.s32.totalorder %s1693_s4, %s1299_s19  ;;  %p1306_p6 = scmp.lt.u32.totalorder %s1299_s19, %s1693_s4 }
  0x45   : > { %p1302_p2 = pnand %p1300_p9, %p1525_p0 }
  0x47   : > { %p1303_p3 = pneg %p1302_p2 }
  0x49   : > { %p1308_p7 = pnand %p1306_p6, %p1303_p3 }
  0x4b   : > { %1311 = shalt.err (!%p1308_p7)
}
  0x4c   : > { %s1312_s10 = scalar_lea.vmem %s221_s15, 1024  ;;  %p1320_p5 = scmp.lt.s32.totalorder %s221_s15, %s221_s15 }
  0x4d   : > { %p1313_p11 = scmp.ne.s32.totalorder %s221_s15, %s1312_s10  ;;  %p1321_p8 = scmp.lt.s32.totalorder %s1312_s10, %s1312_s10 }
  0x4f   : > { %p1315_p13 = pnand %p1313_p11, %p1525_p0  ;;  %p1322_p10 = por %p1321_p8, %p1320_p5 }
  0x51   : > { %p1316_p1 = pneg %p1315_p13 }
  0x53   : > { %p1323_p4 = pnand %p1322_p10, %p1316_p1 }
  0x55   : > { %1326 = shalt.err (!%p1323_p4)
}
  0x56   : > { %1141 = dma.hbm_to_vmem [thread:$0]  (!%p1509_p12), %s1693_s4, 1024, %s221_s15, [#allocation10], %s1404_s12, %s1404_s12, %s1405_s14  }
  0x57   : > { %p931_p9 = scmp.ge.s32.totalorder %s1399_s24, 2 }
  0x59   : > { %233 = sbr.rel (%p931_p9) target bundleno = 111 (0x6f), region = 36 }
  0x60   : > { %s237_s21 = sand.u32 1, %s1395_s23   ;;  %s992_s16 = sshll.u32 %s1399_s24, 9 }
  0x61   : > { %s932_s11 = sshll.u32 %s237_s21, 6  ;;  %s248_s19 = scalar_lea.hbm %s1689_s0, %s992_s16 }
  0x62   : > { %p1706_p4 = scmp.ne.s32.totalorder %s1701_s30, 0  ;;  %s241_s12 = scalar_lea.vmem [#allocation3], %s932_s11 }
  0x63   : > { %s261_s14 = sshll.u32 %s241_s12, 4  ;;  %s1406_s27 = smov 1024   ;;  %s262_s14 = int_to_ptr.vmem [resolvable:$true] %s261_s14 }
  0x64   : > { %s1113_s15 = scalar_select %p1706_p4, [#allocation0], [#allocation14] }
  0x65   : > { %1114 = sst [smem:[#allocation13]] (%p1706_p4), %s1406_s27  ;;  %s1407_s28 = smov 512  }
  0x66   : > { %s253_s20 = sld [smem:[%s1113_s15]]   ;;  %s1408_s24 = smov 4  }
  0x67   : > { %1115 = sst [smem:[#allocation13 + $0x1]] (%p1706_p4), %s1407_s28  ;;  %s1409_s9 = smov 128  }
  0x68   : > { %1116 = sst [smem:[#allocation13 + $0x2]] (%p1706_p4), %s1408_s24  ;;  %s1410_s13 = smov 8  }
  0x69   : > { %1117 = sst [smem:[#allocation13 + $0x3]] (%p1706_p4), %s1409_s9  ;;  %s238_s16 = scalar_lea.sflag [#allocation4], %s237_s21 }
  0x6a   : > { %1118 = sst [smem:[#allocation13 + $0x4]] (%p1706_p4), %s1409_s9  ;;  %s1411_s11 = smov [#allocation12]  }
  0x6b   : > { %1119 = sst [smem:[#allocation13 + $0x5]] (%p1706_p4), %s1410_s13 }
  0x6c   : > { %s936_s10 = sshll.u32 %s253_s20, 26 }
  0x6d   : > { %s937_s29 = sadd.s32 134217728, %s936_s10 }
  0x6e   : > { %1120 = dma.general (%p1706_p4), %s248_s19, 1024, %s262_s14, %s238_s16, %s1411_s11, [#allocation13], %s937_s29, 0  }
  0x6f PF: > { %p1707_p10 = scmp.ne.s32.totalorder %s1703_s8, 0 }
  0x70   : > { %s288_s17 = sand.u32 (!%p1707_p10), 1, %s1391_s22   ;;  %p1708_p12 = scmp.ne.s32.totalorder (!%p1707_p10), %s1702_s7, 0 }
  0x71   : > { %286 = sbr.rel (%p1707_p10) target bundleno = 1040 (0x410), region = 44  ;;  %s939_s18 = sshll.u32 (!%p1707_p10), %s288_s17, 6 }
  0x72   : > { %s289_s15 = scalar_lea.sflag (!%p1707_p10), [#allocation4], %s288_s17  ;;  %s1622_s12 = scalar_lea.vmem (!%p1707_p10), [#allocation3], %s939_s18 }
  0x78   : > { %1370 = dma.done.wait (%p1708_p12), %s289_s15, 1024  }
  0x79   : > { %1372 = vsyncadd (%p1708_p12), %s289_s15, 4294966272  ;;  %p1709_p0 = scmp.eq.s32.totalorder %s1470_s25, 0 }
  0x7b   : > { %1374 = dma.done.wait (%p1709_p0), [#allocation7], 3072   ;;  %p1710_p2 = pmov %p1709_p0 }
  0x7c   : > { %p1711_p3 = pmov %p1709_p0 }
  0x7d   : > { %1376 = vsyncadd (%p1710_p2), [#allocation7], 4294964224 }
  0x7e   : > { %1378 = dma.done.wait (%p1711_p3), [#allocation10], 1024   ;;  %p1712_p6 = pmov %p1709_p0 }
  0x7f   : > { %p1713_p7 = scmp.ne.s32.totalorder %s1470_s25, 0 }
  0x80   : > { %1380 = vsyncadd (%p1712_p6), [#allocation10], 4294966272  ;;  %v1412_v0 = vmov (!%p1713_p7), 0.0  }
  0x81   : > { %333 = sbr.rel (%p1713_p7) target bundleno = 136 (0x88), region = 64  ;;  %334 = vst [vmem:[#allocation2] sm:$0x3] (!%p1713_p7), %v1412_v0 }
  0x88 PF: > { %v1197_v1 = vld [vmem:[#allocation6 + $0x40] sm:$0xff]   ;;  %v1199_v3 = vld [vmem:[#allocation6 + $0x48] sm:$0xff]   ;;  %v1201_v5 = vld [vmem:[#allocation6 + $0x50] sm:$0xff]   ;;  %p968_p11 = scmp.ne.s32.totalorder %s1470_s25, 1 }
  0x89   : > { %v1198_v2 = vld [vmem:[#allocation6] sm:$0xff]   ;;  %993 = vmatprep.subr.bf16.mxu0 %v1197_v1  ;;  %1091 = vmatprep.subr.bf16.mxu1 %v1197_v1  ;;  %v1200_v4 = vld [vmem:[#allocation6 + $0x8] sm:$0xff]   ;;  %v1202_v6 = vld [vmem:[#allocation6 + $0x10] sm:$0xff]   ;;  %vm1414_vm0 = vmmov (!%p968_p11), 0   ;;  %vm831_vm1 = vcmask (!%p968_p11), 1041408  }
  0x8a   : > { %994 = vmatpush3.bf16.msra.mxu0 %v1198_v2  ;;  %1099 = vmatpush3.bf16.msra.mxu1 %v1198_v2  ;;  %v1203_v7 = vld [vmem:[#allocation6 + $0x58] sm:$0xff]   ;;  %v1205_v9 = vld [vmem:[#allocation6 + $0x60] sm:$0xff]   ;;  %v1207_v11 = vld [vmem:[#allocation6 + $0x68] sm:$0xff]  }
  0x8b   : > { %995 = vmatprep.subr.bf16.mxu0 %v1199_v3  ;;  %1092 = vmatprep.subr.bf16.mxu1 %v1199_v3  ;;  %v1204_v8 = vld [vmem:[#allocation6 + $0x18] sm:$0xff]   ;;  %v1206_v10 = vld [vmem:[#allocation6 + $0x20] sm:$0xff]   ;;  %v1208_v14 = vld [vmem:[#allocation6 + $0x28] sm:$0xff]  }
  0x8c   : > { %v1215_v12 = vld [vmem:[%s1622_s12 + $0x4] ss:$8 sps:$4 sm:$0xff]   ;;  %v1209_v15 = vld [vmem:[#allocation6 + $0x70] sm:$0xff]   ;;  %v1211_v17 = vld [vmem:[#allocation6 + $0x78] sm:$0xff]  }
  0x8d   : > { %v1218_v13 = vld [vmem:[%s1622_s12 + $0x24] ss:$8 sps:$4 sm:$0xff]   ;;  %543 = vmatprep.mubr.bf16.mxu0 %v1215_v12  ;;  %v1210_v16 = vld [vmem:[#allocation6 + $0x30] sm:$0xff]   ;;  %v1212_v18 = vld [vmem:[#allocation6 + $0x38] sm:$0xff]  }
  0x8e   : > { %996 = vmatpush3.bf16.msra.mxu0 %v1200_v4  ;;  %1100 = vmatpush3.bf16.msra.mxu1 %v1200_v4  ;;  %v1213_v19 = vld [vmem:[%s1622_s12] ss:$8 sps:$4 sm:$0xff]   ;;  %v1219_v21 = vld [vmem:[%s1622_s12 + $0x14] ss:$8 sps:$4 sm:$0xff]   ;;  %v1223_v23 = vld [vmem:[%s1622_s12 + $0x10] ss:$8 sps:$4 sm:$0xff]  }
  0x8f   : > { %997 = vmatprep.subr.bf16.mxu0 %v1201_v5  ;;  %1093 = vmatprep.subr.bf16.mxu1 %v1201_v5  ;;  %v1216_v20 = vld [vmem:[%s1622_s12 + $0x20] ss:$8 sps:$4 sm:$0xff]   ;;  %v1221_v22 = vld [vmem:[%s1622_s12 + $0x34] ss:$8 sps:$4 sm:$0xff]   ;;  %v1224_v24 = vld [vmem:[%s1622_s12 + $0x30] ss:$8 sps:$4 sm:$0xff]  }
  0x90   : > { %559 = vmatprep.mubr.bf16.mxu1 %v1218_v13  ;;  %v576_v1 = vld [vmem:[#allocation2] sm:$0x1]  ;;  %v588_v2 = vld [vmem:[#allocation2 + $0x1] sm:$0x1]  ;;  %v1234_v13 = vld [vmem:[#allocation9 + $0x8] sm:$0xff] (!%p968_p11)  }
  0x91   : > { %v1228_v12 = vld [vmem:[#allocation8 + $0x18] sm:$0xff] (!%p968_p11)  }
  0x92   : > { %998 = vmatpush3.bf16.msra.mxu0 %v1202_v6  ;;  %1101 = vmatpush3.bf16.msra.mxu1 %v1202_v6 }
  0x93   : > { %999 = vmatprep.subr.bf16.mxu0 %v1203_v7  ;;  %1094 = vmatprep.subr.bf16.mxu1 %v1203_v7  ;;  %v1225_v7 = vld [vmem:[#allocation8] sm:$0xff] (!%p968_p11)  }
  0x96   : > { %1000 = vmatpush3.bf16.msra.mxu0 %v1204_v8  ;;  %1102 = vmatpush3.bf16.msra.mxu1 %v1204_v8  ;;  %v1413_v8 = vmov (!%p968_p11), 0.0  }
  0x97   : > { %1001 = vmatprep.subr.bf16.mxu0 %v1205_v9  ;;  %1095 = vmatprep.subr.bf16.mxu1 %v1205_v9  ;;  %v1226_v9 = vld [vmem:[#allocation8 + $0x8] sm:$0xff] (!%p968_p11)  }
  0x9a   : > { %1002 = vmatpush3.bf16.msra.mxu0 %v1206_v10  ;;  %1103 = vmatpush3.bf16.msra.mxu1 %v1206_v10  ;;  %v1227_v10 = vld [vmem:[#allocation8 + $0x10] sm:$0xff] (!%p968_p11)  }
  0x9b   : > { %1003 = vmatprep.subr.bf16.mxu0 %v1207_v11  ;;  %1096 = vmatprep.subr.bf16.mxu1 %v1207_v11  ;;  %v1233_v11 = vld [vmem:[#allocation9] sm:$0xff] (!%p968_p11)  }
  0x9e   : > { %1004 = vmatpush3.bf16.msra.mxu0 %v1208_v14  ;;  %1104 = vmatpush3.bf16.msra.mxu1 %v1208_v14  ;;  %v1229_v14 = vld [vmem:[#allocation8 + $0x20] sm:$0xff] (!%p968_p11)  }
  0x9f   : > { %1005 = vmatprep.subr.bf16.mxu0 %v1209_v15  ;;  %1097 = vmatprep.subr.bf16.mxu1 %v1209_v15  ;;  %v1235_v15 = vld [vmem:[#allocation9 + $0x10] sm:$0xff] (!%p968_p11)  }
  0xa2   : > { %1006 = vmatpush3.bf16.msra.mxu0 %v1210_v16  ;;  %1105 = vmatpush3.bf16.msra.mxu1 %v1210_v16  ;;  %v1230_v16 = vld [vmem:[#allocation8 + $0x28] sm:$0xff] (!%p968_p11)  }
  0xa3   : > { %1007 = vmatprep.subr.bf16.mxu0 %v1211_v17  ;;  %1098 = vmatprep.subr.bf16.mxu1 %v1211_v17  ;;  %v1236_v17 = vld [vmem:[#allocation9 + $0x18] sm:$0xff] (!%p968_p11)  }
  0xa6   : > { %1008 = vmatpush3.bf16.msra.mxu0 %v1212_v18  ;;  %1106 = vmatpush3.bf16.msra.mxu1 %v1212_v18  ;;  %v1231_v18 = vld [vmem:[#allocation8 + $0x30] sm:$0xff] (!%p968_p11)  }
  0xa7   : > { %1051 = vmatprep.subr.bf16.mxu0 (!%p968_p11), %v1413_v8  ;;  %1071 = vmatprep.subr.bf16.mxu1 (!%p968_p11), %v1413_v8 }
  0xa9   : > { %544 = vmatmul.mubr.bf16.vlgmr.msra.gmra.mrb[0].mxu0 %v1213_v19  ;;  %560 = vmatmul.mubr.bf16.vlgmr.msra.gmra.mrb[0].mxu1 %v1216_v20  ;;  %v1237_v20 = vld [vmem:[#allocation9 + $0x20] sm:$0xff] (!%p968_p11)  }
  0xaa   : > { %551 = vmatprep.mubr.bf16.mxu0 %v1219_v21  ;;  %567 = vmatprep.mubr.bf16.mxu1 %v1221_v22  ;;  %v1232_v22 = vld [vmem:[#allocation8 + $0x38] sm:$0xff] (!%p968_p11)  }
  0xab   : > { %1052 = vmatpush3.bf16.msra.mxu0 (!%p968_p11), %v1225_v7  ;;  %1072 = vmatpush3.bf16.msra.mxu1 (!%p968_p11), %v1233_v11 }
  0xac   : > { %1053 = vmatprep.subr.bf16.mxu0 (!%p968_p11), %v1413_v8  ;;  %1073 = vmatprep.subr.bf16.mxu1 (!%p968_p11), %v1413_v8 }
  0xaf   : > { %1054 = vmatpush3.bf16.msra.mxu0 (!%p968_p11), %v1226_v9  ;;  %1074 = vmatpush3.bf16.msra.mxu1 (!%p968_p11), %v1234_v13 }
  0xb0   : > { %1055 = vmatprep.subr.bf16.mxu0 (!%p968_p11), %v1413_v8  ;;  %1075 = vmatprep.subr.bf16.mxu1 (!%p968_p11), %v1413_v8 }
  0xb1   : > { %552 = vmatmul.mubr.bf16.gmra.mrb[4].mxu0 %v1223_v23  ;;  %568 = vmatmul.mubr.bf16.gmra.mrb[4].mxu1 %v1224_v24  ;;  %v1238_v23 = vld [vmem:[#allocation9 + $0x28] sm:$0xff] (!%p968_p11)  }
  0xb2   : > { %1067 = vmatprep.mubr.msk.bf16.mxu0 (!%p968_p11), %vm1414_vm0, %v1413_v8  ;;  %1087 = vmatprep.mubr.msk.bf16.mxu1 (!%p968_p11), %vm1414_vm0, %v1413_v8 }
  0xb3   : > { %1056 = vmatpush3.bf16.msra.mxu0 (!%p968_p11), %v1227_v10  ;;  %1076 = vmatpush3.bf16.msra.mxu1 (!%p968_p11), %v1235_v15 }
  0xb4   : > { %1057 = vmatprep.subr.bf16.mxu0 (!%p968_p11), %v1413_v8  ;;  %1077 = vmatprep.subr.bf16.mxu1 (!%p968_p11), %v1413_v8 }
  0xb7   : > { %1058 = vmatpush3.bf16.msra.mxu0 (!%p968_p11), %v1228_v12  ;;  %1078 = vmatpush3.bf16.msra.mxu1 (!%p968_p11), %v1236_v17 }
  0xb8   : > { %1059 = vmatprep.subr.bf16.mxu0 (!%p968_p11), %v1413_v8  ;;  %1079 = vmatprep.subr.bf16.mxu1 (!%p968_p11), %v1413_v8 }
  0xbb   : > { %1060 = vmatpush3.bf16.msra.mxu0 (!%p968_p11), %v1229_v14  ;;  %1080 = vmatpush3.bf16.msra.mxu1 (!%p968_p11), %v1237_v20 }
  0xbc   : > { %1061 = vmatprep.subr.bf16.mxu0 (!%p968_p11), %v1413_v8  ;;  %1081 = vmatprep.subr.bf16.mxu1 (!%p968_p11), %v1413_v8 }
  0xbf   : > { %1062 = vmatpush3.bf16.msra.mxu0 (!%p968_p11), %v1230_v16  ;;  %1082 = vmatpush3.bf16.msra.mxu1 (!%p968_p11), %v1238_v23 }
  0xc0   : > { %1063 = vmatprep.subr.bf16.mxu0 (!%p968_p11), %v1413_v8  ;;  %1083 = vmatprep.subr.bf16.mxu1 (!%p968_p11), %v1413_v8 }
  0xc3   : > { %1064 = vmatpush3.bf16.msra.mxu0 (!%p968_p11), %v1231_v18 }
  0xc4   : > { %1065 = vmatprep.subr.bf16.mxu0 (!%p968_p11), %v1413_v8 }
  0xc7   : > { %1066 = vmatpush3.bf16.msra.mxu0 (!%p968_p11), %v1232_v22 }
 0x17c   : > { %v1009_v25 = vpop.f32.mrb[0].mxu0  ;;  %v1021_v26 = vpop.f32.mrb[0].mxu1 }
 0x17d   : > { %v1010_v27 = vpop.f32.mrb[1].mxu0  ;;  %v1022_v28 = vpop.f32.mrb[1].mxu1 }
 0x17e   : > { %v1011_v29 = vadd.f32 %v1010_v27, %v1009_v25  ;;  %v1023_v30 = vadd.f32 %v1022_v28, %v1021_v26  ;;  %v1012_v31 = vpop.f32.mrb[2].mxu0  ;;  %v1024_v32 = vpop.f32.mrb[2].mxu1  ;;  %v1239_v25 = vld [vmem:[#allocation9 + $0x30] sm:$0xff] (!%p968_p11)   ;;  %v1240_v26 = vld [vmem:[#allocation9 + $0x38] sm:$0xff] (!%p968_p11)  }
 0x17f   : > { %v1013_v33 = vpop.f32.mrb[3].mxu0  ;;  %v1025_v34 = vpop.f32.mrb[3].mxu1  ;;  %1084 = vmatpush3.bf16.msra.mxu1 (!%p968_p11), %v1239_v25  ;;  %v969_v27 = vld [vmem:[%s1692_s3] ss:$0 sm:$0xff] (!%p968_p11) }
 0x180   : > { %v1014_v35 = vadd.f32 %v1013_v33, %v1012_v31  ;;  %v1026_v36 = vadd.f32 %v1025_v34, %v1024_v32  ;;  %1085 = vmatprep.subr.bf16.mxu1 (!%p968_p11), %v1413_v8  ;;  %v978_v34 = vld [vmem:[%s1694_s5] ss:$0 sm:$0xff] (!%p968_p11) }
 0x182   : > { %v577_v37 = vadd.f32 %v1014_v35, %v1011_v29  ;;  %v589_v38 = vadd.f32 %v1026_v36, %v1023_v30 }
 0x183   : > { %1086 = vmatpush3.bf16.msra.mxu1 (!%p968_p11), %v1240_v26 }
 0x184   : > { %v1015_v39 = vpop.f32.mrb[4].mxu0  ;;  %v1027_v40 = vpop.f32.mrb[4].mxu1 }
 0x185   : > { %v1016_v41 = vpop.f32.mrb[5].mxu0  ;;  %v1028_v42 = vpop.f32.mrb[5].mxu1 }
 0x186   : > { %v1017_v43 = vadd.f32 %v1016_v41, %v1015_v39  ;;  %v1029_v44 = vadd.f32 %v1028_v42, %v1027_v40  ;;  %v1018_v45 = vpop.f32.mrb[6].mxu0  ;;  %v1030_v46 = vpop.f32.mrb[6].mxu1 }
 0x187   : > { %v1019_v47 = vpop.f32.mrb[7].mxu0  ;;  %v1031_v48 = vpop.f32.mrb[7].mxu1 }
 0x188   : > { %v578_v49 = vadd.f32 %v1017_v43, %v577_v37  ;;  %v590_v50 = vadd.f32 %v1029_v44, %v589_v38  ;;  %v1020_v51 = vadd.f32 %v1019_v47, %v1018_v45  ;;  %v1032_v52 = vadd.f32 %v1031_v48, %v1030_v46 }
 0x18a   : > { %v579_v53 = vadd.f32 %v1020_v51, %v578_v49  ;;  %v591_v54 = vadd.f32 %v1032_v52, %v590_v50 }
 0x18c   : > { %v580_v55 = vrot.slane %v579_v53, 4  ;;  %v592_v56 = vrot.slane %v591_v54, 4 }
 0x18e   : > { %v581_v57 = vadd.f32 %v580_v55, %v579_v53  ;;  %v593_v58 = vadd.f32 %v592_v56, %v591_v54 }
 0x190   : > { %v582_v59 = vrot.slane %v581_v57, 2  ;;  %v594_v60 = vrot.slane %v593_v58, 2 }
 0x192   : > { %v583_v61 = vadd.f32 %v582_v59, %v581_v57  ;;  %v595_v62 = vadd.f32 %v594_v60, %v593_v58 }
 0x194   : > { %v584_v63 = vrot.slane %v583_v61, 1  ;;  %v596_v0 = vrot.slane %v595_v62, 1  ;;  %603 = sbr.rel (%p968_p11) target bundleno = 1015 (0x3f7), region = 68 }
 0x196   : > { %v585_v3 = vadd.f32 %v584_v63, %v583_v61  ;;  %v597_v4 = vadd.f32 %v596_v0, %v595_v62 }
 0x198   : > { %v586_v5 = vadd.f32 %v585_v3, %v576_v1  ;;  %v598_v6 = vadd.f32 %v597_v4, %v588_v2 }
 0x19a   : > { %587 = vst [vmem:[#allocation2] sm:$0x1] %v586_v5  ;;  %599 = vst [vmem:[#allocation2 + $0x1] sm:$0x1] %v598_v6 }
 0x1a1   : > { %v604_v19 = vld [vmem:[#allocation2] sm:$0x3] }
 0x1a2   : > { %v605_v21 = vmul.f32 0.015625, %v604_v19 }
 0x1a4   : > { %v606_v24 = vpack.c.bf16 %v605_v21, %v605_v21 }
 0x1a6   : > { %1068 = vmatmul.mubr.bf16.vlgmr.msra.gmra.mrb[0].mxu0 %v606_v24 }
 0x279   : > { %v712_v28 = vpop.f32.mrb[0].mxu0 }
 0x27a   : > { %v713_v29 = vadd.f32 %v969_v27, %v712_v28  ;;  %v1069_v30 = vpop.f32.mrb[1].mxu0 }
 0x27b   : > { %v715_v31 = vpop.f32.mrb[2].mxu0 }
 0x27c   : > { %v718_v32 = vpack.c.bf16 %v713_v29, %v713_v29  ;;  %v1070_v33 = vpop.f32.mrb[3].mxu0 }
 0x27e   : > { %1088 = vmatmul.mubr.bf16.vlgmr.msra.gmra.mrb[0].mxu1 %v718_v32 }
 0x351   : > { %v824_v35 = vpop.f32.mrb[0].mxu1 }
 0x352   : > { %v825_v36 = vadd.f32 %v978_v34, %v824_v35  ;;  %v1089_v37 = vpop.f32.mrb[1].mxu1 }
 0x353   : > { %v827_v38 = vpop.f32.mrb[2].mxu1 }
 0x354   : > { %v1090_v39 = vpop.f32.mrb[3].mxu1  ;;  %v830_v40 = vmul.f32 %v825_v36, %v825_v36 }
 0x356   : > { %v832_v41 = vsel %vm831_vm1, %v830_v40, 0.0 }
 0x357   : > { %833 = vadd.xlane.f32.xlu0 %v832_v41 }
 0x3e4   : > { %v834_v42 = vpop.xlane.xlu0 %833 }
 0x3e5   : > { %v835_v43 = vmax.f32 %v834_v42, 1e-24 }
 0x3e7   : > { %1241 = vrsqrt.f32 %v835_v43 }
 0x3f1   : > { %v1242_v44 = vpop.eup %1241 }
 0x3f2   : > { %v837_v45 = vmul.f32 64.0, %v1242_v44 }
 0x3f4   : > { %v838_v46 = vmul.f32 %v837_v45, %v825_v36 }
 0x3f6   : > { %839 = vst [vmem:[#allocation11] sm:$0x3] %v838_v46 }
 0x3f7 PF: > { %p1148_p13 = scmp.eq.s32.totalorder %s1470_s25, 1  ;;  %s1415_s19 = smov [#allocation11]  }
 0x3f8   : > { %s847_s14 = sshll.u32 %s1415_s19, 4  ;;  %s848_s14 = int_to_ptr.vmem [resolvable:$true] %s847_s14 }
 0x3f9   : > { %s1327_s20 = scalar_lea.vmem %s848_s14, 32  ;;  %p1334_p9 = scmp.lt.s32.totalorder %s848_s14, %s848_s14 }
 0x3fa   : > { %p1328_p1 = scmp.ne.s32.totalorder %s848_s14, %s1327_s20  ;;  %p1335_p4 = scmp.lt.s32.totalorder %s1327_s20, %s1327_s20 }
 0x3fc   : > { %p1329_p5 = pnand %p1328_p1, %p1148_p13  ;;  %p1336_p10 = por %p1335_p4, %p1334_p9 }
 0x3fe   : > { %p1330_p8 = pneg %p1329_p5 }
 0x400   : > { %p1337_p12 = pnand %p1336_p10, %p1330_p8 }
 0x402   : > { %1340 = shalt.err (!%p1337_p12)
}
 0x403   : > { %s1341_s24 = scalar_lea.hbm %s1695_s6, 32 }
 0x404   : > { %p1342_p0 = scmp.ne.s32.totalorder %s1695_s6, %s1341_s24  ;;  %p1347_p6 = scmp.lt.u32.totalorder %s1341_s24, %s1695_s6 }
 0x406   : > { %p1343_p2 = pnand %p1342_p0, %p1148_p13 }
 0x408   : > { %p1344_p3 = pneg %p1343_p2 }
 0x40a   : > { %p1349_p7 = pnand %p1347_p6, %p1344_p3 }
 0x40c   : > { %1352 = shalt.err (!%p1349_p7)
}
 0x40d   : > { %1129 = dma.vmem_to_hbm [thread:$0]  (%p1148_p13), %s848_s14, 32, %s1695_s6, [#allocation5]  }
 0x40e   : > { %1382 = dma.done.wait (%p1148_p13), [#allocation5], 32  }
 0x40f   : > { %1384 = vsyncadd (%p1148_p13), [#allocation5], 4294967264 }
 0x410 PF: > { %s1714_s17 = sld [smem:[#allocation19_spill]]  ;;  %p19_p11 = scmp.ge.s32.totalorder %s1473_s26, 4  }
 0x411   : > { %s1715_s21 = smov %s1391_s22  ;;  %s1716_s22 = smov %s1395_s23 }
 0x412   : > { %s1718_s24 = smov %s1473_s26  ;;  %21 = sbr.rel (!%p19_p11) target bundleno = 6 (0x6), region = 106 }
 0x416   : > { %s1717_s23 = smov %s1714_s17 }
 0x419   :  { %860 = vsyncpa [#allocation4], 1 }
 0x41a   :  { %862 = vsyncpa [#allocation4 + $0x1], 1 }
 0x41b   :  { %863 = vsyncpa [#allocation7], 1 }
 0x41c   :  { %864 = vsyncpa [#allocation10], 1 }
 0x41d   :  { %865 = vsyncpa [#allocation5], 1 }
 0x41e   :  { %867 = vsyncpa [#allocation5 + $0x1], 1 }

</bundles_post_ra>
